<compile_context>
chip_gen: v6e
topology: v6e:2x2x1
jax: 0.10.0
libtpu: 0.0.40
codegen_flags: <defaults>
</compile_context>

<pallas_src>
import jax
import jax.numpy as jnp
from jax.experimental import pallas as pl
from jax.experimental.pallas import tpu as pltpu


def _addmm_kernel(x_ref, w_ref, b_ref, o_ref, acc_ref):
    # grid = (N//tn, M//tm, K//tk)  ->  (j, i, k); k (reduction) is last.
    # j is outermost so that, when K fits in a single tk tile (the common GPT-2
    # case), the weight column-slab block index (0, j) is unchanged across all
    # i steps and Pallas skips the redundant HBM re-fetch of W.
    k = pl.program_id(2)

    @pl.when(k == 0)
    def _():
        # Fuse the bias into the accumulator init (saves the epilogue add and
        # the zero-fill).
        acc_ref[...] = jnp.broadcast_to(
            b_ref[...].astype(jnp.float32), acc_ref.shape
        )

    acc_ref[...] += jnp.dot(
        x_ref[...], w_ref[...], preferred_element_type=jnp.float32
    )

    @pl.when(k == pl.num_programs(2) - 1)
    def _():
        o_ref[...] = acc_ref[...].astype(o_ref.dtype)


def _round_up(a, m):
    return (a + m - 1) // m * m


def transpose_linear(x, weight, bias, *, tm=256, tn=512, tk=1024):
    """Pallas equivalent of TransposeLinear.forward.

    x:      (..., nx)
    weight: (nx, nf)
    bias:   (nf,)
    returns (..., nf)

    Default tiles are MXU-sized (256-aligned M/N, 1024-deep K) and are adapted
    down for small problems.  Double-buffered f32 tiles at the default sizes
    use ~7.5 MiB of VMEM, well inside the default scoped-VMEM limit on
    v5e/v6e/v7x, so no vmem_limit_bytes override is needed.
    """
    nx, nf = weight.shape
    orig_shape = x.shape
    x2d = x.reshape(-1, nx)
    M, K = x2d.shape
    N = nf
    out_dtype = x.dtype

    # Sublane granularity: 8 for 4-byte dtypes, 16 for bf16, 32 for 1-byte.
    sub = max(8, 32 // jnp.dtype(out_dtype).itemsize)

    # Shrink tiles for small problems while staying (sublane, 128)-aligned.
    tm = min(tm, _round_up(M, sub))
    tn = min(tn, _round_up(N, 128))
    tk = min(tk, _round_up(K, 128))

    # Zero-pad to tile multiples (zeros contribute nothing to the matmul);
    # the padded rows/cols are sliced off the output below.  This removes the
    # old hard assert on tile divisibility.
    Mp, Kp, Np = _round_up(M, tm), _round_up(K, tk), _round_up(N, tn)
    if (Mp, Kp) != (M, K):
        x2d = jnp.pad(x2d, ((0, Mp - M), (0, Kp - K)))
    w2d = weight
    if (Kp, Np) != (K, N):
        w2d = jnp.pad(weight, ((0, Kp - K), (0, Np - N)))
    b2d = bias.reshape(1, N)
    if Np != N:
        b2d = jnp.pad(b2d, ((0, 0), (0, Np - N)))

    grid = (Np // tn, Mp // tm, Kp // tk)  # (j, i, k): reduction axis last

    out = pl.pallas_call(
        _addmm_kernel,
        out_shape=jax.ShapeDtypeStruct((Mp, Np), out_dtype),
        grid_spec=pltpu.PrefetchScalarGridSpec(
            num_scalar_prefetch=0,
            grid=grid,
            in_specs=[
                pl.BlockSpec((tm, tk), lambda j, i, k: (i, k)),  # x tile
                pl.BlockSpec((tk, tn), lambda j, i, k: (k, j)),  # W tile
                pl.BlockSpec((1, tn), lambda j, i, k: (0, j)),   # bias tile
            ],
            out_specs=pl.BlockSpec((tm, tn), lambda j, i, k: (i, j)),
            scratch_shapes=[pltpu.VMEM((tm, tn), jnp.float32)],
        ),
        compiler_params=pltpu.CompilerParams(
            # (j, i) parallel -> megacore sharding on v7x; k is the reduction.
            dimension_semantics=("parallel", "parallel", "arbitrary"),
        ),
    )(x2d, w2d, b2d)

    if (Mp, Np) != (M, N):
        out = out[:M, :N]
    return out.reshape(orig_shape[:-1] + (nf,))


if __name__ == "__main__":
    # Module config: nf = output features, nx = input features
    nx, nf = 256, 128
    batch, seq = 2, 8

    key = jax.random.PRNGKey(0)
    k_w, k_x, k_b, k_x2 = jax.random.split(key, 4)

    # Deterministic init mirroring nn.init.normal_(w, std=0.02) and zero bias.
    weight = 0.02 * jax.random.normal(k_w, (nx, nf), dtype=jnp.float32)
    bias = jnp.zeros((nf,), dtype=jnp.float32)
    x = jax.random.normal(k_x, (batch, seq, nx), dtype=jnp.float32)

    y = jax.block_until_ready(transpose_linear(x, weight, bias))
    y_ref = (x.reshape(-1, nx) @ weight + bias).reshape(batch, seq, nf)
    assert y.shape == (batch, seq, nf)
    assert jnp.allclose(y, y_ref, atol=1e-5, rtol=1e-5)

    # Second check: non-tile-divisible shapes + nonzero bias, exercising the
    # zero-padding path and the fused bias-into-accumulator init.
    nx2, nf2 = 200, 120
    weight2 = 0.02 * jax.random.normal(k_w, (nx2, nf2), dtype=jnp.float32)
    bias2 = 0.1 * jax.random.normal(k_b, (nf2,), dtype=jnp.float32)
    x2 = jax.random.normal(k_x2, (3, 7, nx2), dtype=jnp.float32)
    y2 = jax.block_until_ready(transpose_linear(x2, weight2, bias2))
    y2_ref = (x2.reshape(-1, nx2) @ weight2 + bias2).reshape(3, 7, nf2)
    assert y2.shape == (3, 7, nf2)
    assert jnp.allclose(y2, y2_ref, atol=1e-5, rtol=1e-5)

    print("KERNEL_OK")
</pallas_src>

<mosaic_0001>
module attributes {stable_mosaic.version = 11 : i64} {
  func.func @_addmm_kernel(%arg0: i32, %arg1: i32, %arg2: i32, %arg3: memref<16x256xf32, #tpu.memory_space<vmem>>, %arg4: memref<256x128xf32, #tpu.memory_space<vmem>>, %arg5: memref<1x128xf32, #tpu.memory_space<vmem>>, %arg6: memref<16x128xf32, #tpu.memory_space<vmem>>, %arg7: memref<16x128xf32, #tpu.memory_space<vmem>>) attributes {dimension_semantics = [#tpu.dimension_semantics<parallel>, #tpu.dimension_semantics<parallel>, #tpu.dimension_semantics<arbitrary>], iteration_bounds = array<i64: 1, 1, 1>, scalar_prefetch = 0 : i64, scratch_operands = 1 : i64, tpu.core_type = #tpu.core_type<tc>, window_params = [{transform_indices = @transform_0, window_bounds = array<i64: 16, 256>}, {transform_indices = @transform_1, window_bounds = array<i64: 256, 128>}, {transform_indices = @transform_2, window_bounds = array<i64: 1, 128>}, {transform_indices = @transform_3, window_bounds = array<i64: 16, 128>}]} {
    %c0_i32 = arith.constant 0 : i32
    %0 = arith.cmpi eq, %arg2, %c0_i32 : i32
    %1 = arith.extui %0 : i1 to i32
    %c0_i32_0 = arith.constant 0 : i32
    %2 = arith.cmpi ne, %1, %c0_i32_0 : i32
    scf.if %2 {
      %c0_10 = arith.constant 0 : index
      %c0_11 = arith.constant 0 : index
      %12 = vector.load %arg5[%c0_10, %c0_11] : memref<1x128xf32, #tpu.memory_space<vmem>>, vector<1x128xf32>
      %13 = vector.shape_cast %12 : vector<1x128xf32> to vector<1x128xf32>
      %14 = vector.broadcast %13 : vector<1x128xf32> to vector<16x128xf32>
      %c0_12 = arith.constant 0 : index
      %c0_13 = arith.constant 0 : index
      %15 = vector.load %arg7[%c0_12, %c0_13] : memref<16x128xf32, #tpu.memory_space<vmem>>, vector<16x128xf32>
      tpu.vector_store %arg7[%c0_12, %c0_13], %14 {strides = array<i32>} : memref<16x128xf32, #tpu.memory_space<vmem>>, vector<16x128xf32>,
    } else {
    }
    %c0 = arith.constant 0 : index
    %c0_1 = arith.constant 0 : index
    %3 = vector.load %arg7[%c0, %c0_1] : memref<16x128xf32, #tpu.memory_space<vmem>>, vector<16x128xf32>
    %c0_2 = arith.constant 0 : index
    %c0_3 = arith.constant 0 : index
    %4 = vector.load %arg3[%c0_2, %c0_3] : memref<16x256xf32, #tpu.memory_space<vmem>>, vector<16x256xf32>
    %c0_4 = arith.constant 0 : index
    %c0_5 = arith.constant 0 : index
    %5 = vector.load %arg4[%c0_4, %c0_5] : memref<256x128xf32, #tpu.memory_space<vmem>>, vector<256x128xf32>
    %cst = arith.constant dense<0.000000e+00> : vector<16x128xf32>
    %6 = tpu.matmul %4, %5, %cst {dimension_numbers = #tpu.dot_dimension_numbers<[1], [0], [0], [1], [0, 0, 1, 1], [], []>} : vector<16x256xf32>, vector<256x128xf32>, vector<16x128xf32> -> vector<16x128xf32>
    %7 = arith.addf %3, %6 : vector<16x128xf32>
    %c0_6 = arith.constant 0 : index
    %c0_7 = arith.constant 0 : index
    %8 = vector.load %arg7[%c0_6, %c0_7] : memref<16x128xf32, #tpu.memory_space<vmem>>, vector<16x128xf32>
    tpu.vector_store %arg7[%c0_6, %c0_7], %7 {strides = array<i32>} : memref<16x128xf32, #tpu.memory_space<vmem>>, vector<16x128xf32>,
    %c0_i32_8 = arith.constant 0 : i32
    %9 = arith.cmpi eq, %arg2, %c0_i32_8 : i32
    %10 = arith.extui %9 : i1 to i32
    %c0_i32_9 = arith.constant 0 : i32
    %11 = arith.cmpi ne, %10, %c0_i32_9 : i32
    scf.if %11 {
      %c0_10 = arith.constant 0 : index
      %c0_11 = arith.constant 0 : index
      %12 = vector.load %arg7[%c0_10, %c0_11] : memref<16x128xf32, #tpu.memory_space<vmem>>, vector<16x128xf32>
      %c0_12 = arith.constant 0 : index
      %c0_13 = arith.constant 0 : index
      %13 = vector.load %arg6[%c0_12, %c0_13] : memref<16x128xf32, #tpu.memory_space<vmem>>, vector<16x128xf32>
      tpu.vector_store %arg6[%c0_12, %c0_13], %12 {strides = array<i32>} : memref<16x128xf32, #tpu.memory_space<vmem>>, vector<16x128xf32>,
    } else {
    }
    return
  }
  func.func @transform_0(%arg0: i32, %arg1: i32, %arg2: i32) -> (i32, i32) {
    %c0_i32 = arith.constant 0 : i32
    return %arg1, %arg2 : i32, i32
  }
  func.func @transform_1(%arg0: i32, %arg1: i32, %arg2: i32) -> (i32, i32) {
    %c0_i32 = arith.constant 0 : i32
    return %arg2, %arg0 : i32, i32
  }
  func.func @transform_2(%arg0: i32, %arg1: i32, %arg2: i32) -> (i32, i32) {
    %c0_i32 = arith.constant 0 : i32
    %c0_i32_0 = arith.constant 0 : i32
    return %c0_i32, %arg0 : i32, i32
  }
  func.func @transform_3(%arg0: i32, %arg1: i32, %arg2: i32) -> (i32, i32) {
    %c0_i32 = arith.constant 0 : i32
    return %arg1, %arg0 : i32, i32
  }
}

</mosaic_0001>

<bundles_post_ra>
// kernel: tpu_custom_call.1
= control target key start
LH: loop header
LB: loop body
LE: loop exit
PB: predicated region body
PF: predicated region fallthrough
CT: control target
= control target key end

     0   :  { %8 = vsyncpa [#allocation4], 0  ;;  %s387_s0 = inlined_call_operand.hbm [shape: f32[16,256], index: 0, kind: input, shape index: {}]   ;;  %s388_s1 = inlined_call_operand.hbm [shape: f32[256,128], index: 1, kind: input, shape index: {}]   ;;  %s389_s2 = inlined_call_operand.vmem [shape: f32[1,128], index: 2, kind: input, shape index: {}]   ;;  %s390_s3 = inlined_call_operand.hbm [shape: f32[16,128], index: 3, kind: output, shape index: {}]  }
   0x1   :  { %9 = vsyncpa [#allocation7], 0 }
   0x2   :  { %10 = vsyncpa [#allocation5], 0  ;;  %s342_s12 = smov [#allocation3]  }
   0x3   :  { %s16_s13 = sshll.u32 %s342_s12, 4  ;;  %s17_s13 = int_to_ptr.vmem [resolvable:$true] %s16_s13 }
   0x4   :  { %s284_s14 = scalar_lea.vmem %s17_s13, 512  ;;  %p289_p1 = scmp.lt.s32.totalorder %s17_s13, %s17_s13 }
   0x5   :  { %p285_p0 = scmp.ne.s32.totalorder %s17_s13, %s284_s14  ;;  %p290_p2 = scmp.lt.s32.totalorder %s284_s14, %s284_s14 }
   0x7   :  { %p291_p3 = por %p290_p2, %p289_p1 }
   0x9   :  { %p292_p4 = pnand %p291_p3, %p285_p0 }
   0xb   :  { %295 = shalt.err (!%p292_p4)
}
   0xc   :  { %s343_s15 = smov 256   ;;  %s344_s16 = smov 16  }
   0xd   :  { %22 = dma.hbm_to_vmem [thread:$0]  %s387_s0, 512, %s17_s13, [#allocation4], %s343_s15, %s343_s15, %s344_s16  }
   0xe   :  { %s345_s19 = smov [#allocation6]  }
   0xf   :  { %s28_s20 = sshll.u32 %s345_s19, 4  ;;  %s29_s20 = int_to_ptr.vmem [resolvable:$true] %s28_s20 }
  0x10   :  { %s304_s21 = scalar_lea.vmem %s29_s20, 4096  ;;  %p309_p6 = scmp.lt.s32.totalorder %s29_s20, %s29_s20 }
  0x11   :  { %p305_p5 = scmp.ne.s32.totalorder %s29_s20, %s304_s21  ;;  %p310_p7 = scmp.lt.s32.totalorder %s304_s21, %s304_s21 }
  0x13   :  { %p311_p8 = por %p310_p7, %p309_p6 }
  0x15   :  { %p312_p9 = pnand %p311_p8, %p305_p5 }
  0x17   :  { %315 = shalt.err (!%p312_p9)
}
  0x18   :  { %s346_s22 = smov 128   ;;  %s347_s23 = smov 8  }
  0x19   :  { %34 = dma.hbm_to_vmem [thread:$0]  %s388_s1, 4096, %s29_s20, [#allocation7], %s346_s22, %s346_s22, %s347_s23  }
  0x1a   :  { %336 = dma.done.wait [#allocation4], 512  }
  0x1b   :  { %337 = vsyncadd [#allocation4], 4294966784 }
  0x1c   :  { %338 = dma.done.wait [#allocation7], 4096  }
  0x1d   :  { %339 = vsyncadd [#allocation7], 4294963200  ;;  %v93_v0 = vld [vmem:[#allocation6 + $0xf8] sm:$0xff]  ;;  %v92_v2 = vld [vmem:[#allocation6 + $0xf0] sm:$0xff]  ;;  %s348_s26 = smov [#allocation8]  }
  0x1e   :  { %v77_v1 = vld [vmem:[#allocation6 + $0x78] sm:$0xff]  ;;  %199 = vmatprep.subr.mxu0 %v93_v0  ;;  %237 = vmatprep.subr.mxu1 %v93_v0  ;;  %v76_v3 = vld [vmem:[#allocation6 + $0x70] sm:$0xff]  ;;  %v91_v4 = vld [vmem:[#allocation6 + $0xe8] sm:$0xff]  ;;  %s185_s27 = sshll.u32 %s348_s26, 4  ;;  %s186_s27 = int_to_ptr.vmem [resolvable:$true] %s185_s27 }
  0x1f   :  { %200 = vmatpush3.msra.mxu0 %v77_v1  ;;  %253 = vmatpush3.msra.mxu1 %v77_v1  ;;  %v75_v5 = vld [vmem:[#allocation6 + $0x68] sm:$0xff]  ;;  %v90_v6 = vld [vmem:[#allocation6 + $0xe0] sm:$0xff]  ;;  %v89_v8 = vld [vmem:[#allocation6 + $0xd8] sm:$0xff]  ;;  %s316_s28 = scalar_lea.vmem %s186_s27, 256  ;;  %p321_p11 = scmp.lt.s32.totalorder %s186_s27, %s186_s27 }
  0x20   :  { %201 = vmatprep.subr.mxu0 %v92_v2  ;;  %238 = vmatprep.subr.mxu1 %v92_v2  ;;  %v74_v7 = vld [vmem:[#allocation6 + $0x60] sm:$0xff]  ;;  %v73_v9 = vld [vmem:[#allocation6 + $0x58] sm:$0xff]  ;;  %v88_v10 = vld [vmem:[#allocation6 + $0xd0] sm:$0xff]  ;;  %p317_p10 = scmp.ne.s32.totalorder %s186_s27, %s316_s28  ;;  %p322_p12 = scmp.lt.s32.totalorder %s316_s28, %s316_s28 }
  0x21   :  { %202 = vmatpush3.msra.mxu0 %v76_v3  ;;  %254 = vmatpush3.msra.mxu1 %v76_v3  ;;  %v72_v11 = vld [vmem:[#allocation6 + $0x50] sm:$0xff]  ;;  %v87_v12 = vld [vmem:[#allocation6 + $0xc8] sm:$0xff]  ;;  %v86_v14 = vld [vmem:[#allocation6 + $0xc0] sm:$0xff] }
  0x22   :  { %203 = vmatprep.subr.mxu0 %v91_v4  ;;  %239 = vmatprep.subr.mxu1 %v91_v4  ;;  %v71_v13 = vld [vmem:[#allocation6 + $0x48] sm:$0xff]  ;;  %v70_v15 = vld [vmem:[#allocation6 + $0x40] sm:$0xff]  ;;  %v85_v16 = vld [vmem:[#allocation6 + $0xb8] sm:$0xff]  ;;  %p323_p13 = por %p322_p12, %p321_p11 }
  0x23   :  { %204 = vmatpush3.msra.mxu0 %v75_v5  ;;  %255 = vmatpush3.msra.mxu1 %v75_v5  ;;  %v69_v17 = vld [vmem:[#allocation6 + $0x38] sm:$0xff]  ;;  %v84_v18 = vld [vmem:[#allocation6 + $0xb0] sm:$0xff]  ;;  %v83_v20 = vld [vmem:[#allocation6 + $0xa8] sm:$0xff] }
  0x24   :  { %205 = vmatprep.subr.mxu0 %v90_v6  ;;  %240 = vmatprep.subr.mxu1 %v90_v6  ;;  %v68_v19 = vld [vmem:[#allocation6 + $0x30] sm:$0xff]  ;;  %v67_v21 = vld [vmem:[#allocation6 + $0x28] sm:$0xff]  ;;  %v82_v22 = vld [vmem:[#allocation6 + $0xa0] sm:$0xff]  ;;  %p324_p0 = pnand %p323_p13, %p317_p10 }
  0x25   :  { %206 = vmatpush3.msra.mxu0 %v74_v7  ;;  %256 = vmatpush3.msra.mxu1 %v74_v7  ;;  %v66_v23 = vld [vmem:[#allocation6 + $0x20] sm:$0xff]  ;;  %v81_v24 = vld [vmem:[#allocation6 + $0x98] sm:$0xff]  ;;  %v80_v26 = vld [vmem:[#allocation6 + $0x90] sm:$0xff] }
  0x26   :  { %207 = vmatprep.subr.mxu0 %v89_v8  ;;  %241 = vmatprep.subr.mxu1 %v89_v8  ;;  %v65_v25 = vld [vmem:[#allocation6 + $0x18] sm:$0xff]  ;;  %v64_v27 = vld [vmem:[#allocation6 + $0x10] sm:$0xff]  ;;  %v79_v28 = vld [vmem:[#allocation6 + $0x88] sm:$0xff] }
  0x27   :  { %208 = vmatpush3.msra.mxu0 %v73_v9  ;;  %257 = vmatpush3.msra.mxu1 %v73_v9  ;;  %v63_v29 = vld [vmem:[#allocation6 + $0x8] sm:$0xff]  ;;  %v78_v30 = vld [vmem:[#allocation6 + $0x80] sm:$0xff]  ;;  %v61_v33 = vld [vmem:[#allocation3 + $0x18] sm:$0xff] }
  0x28   :  { %209 = vmatprep.subr.mxu0 %v88_v10  ;;  %242 = vmatprep.subr.mxu1 %v88_v10  ;;  %v62_v31 = vld [vmem:[#allocation6] sm:$0xff]  ;;  %v59_v32 = vld [vmem:[#allocation3 + $0x8] sm:$0xff]  ;;  %v60_v35 = vld [vmem:[#allocation3 + $0x10] sm:$0xff] }
  0x29   :  { %210 = vmatpush3.msra.mxu0 %v72_v11  ;;  %258 = vmatpush3.msra.mxu1 %v72_v11  ;;  %v58_v34 = vld [vmem:[#allocation3] sm:$0xff] }
  0x2a   :  { %211 = vmatprep.subr.mxu0 %v87_v12  ;;  %243 = vmatprep.subr.mxu1 %v87_v12  ;;  %v198_v38 = vld [vmem:[%s389_s2] ss:$0 sm:$0xff] }
  0x2b   :  { %212 = vmatpush3.msra.mxu0 %v71_v13  ;;  %259 = vmatpush3.msra.mxu1 %v71_v13 }
  0x2c   :  { %213 = vmatprep.subr.mxu0 %v86_v14  ;;  %244 = vmatprep.subr.mxu1 %v86_v14 }
  0x2d   :  { %214 = vmatpush3.msra.mxu0 %v70_v15  ;;  %260 = vmatpush3.msra.mxu1 %v70_v15 }
  0x2e   :  { %215 = vmatprep.subr.mxu0 %v85_v16  ;;  %245 = vmatprep.subr.mxu1 %v85_v16 }
  0x2f   :  { %216 = vmatpush3.msra.mxu0 %v69_v17  ;;  %261 = vmatpush3.msra.mxu1 %v69_v17 }
  0x30   :  { %217 = vmatprep.subr.mxu0 %v84_v18  ;;  %246 = vmatprep.subr.mxu1 %v84_v18 }
  0x31   :  { %218 = vmatpush3.msra.mxu0 %v68_v19  ;;  %262 = vmatpush3.msra.mxu1 %v68_v19 }
  0x32   :  { %219 = vmatprep.subr.mxu0 %v83_v20  ;;  %247 = vmatprep.subr.mxu1 %v83_v20 }
  0x33   :  { %220 = vmatpush3.msra.mxu0 %v67_v21  ;;  %263 = vmatpush3.msra.mxu1 %v67_v21 }
  0x34   :  { %221 = vmatprep.subr.mxu0 %v82_v22  ;;  %248 = vmatprep.subr.mxu1 %v82_v22 }
  0x35   :  { %222 = vmatpush3.msra.mxu0 %v66_v23  ;;  %264 = vmatpush3.msra.mxu1 %v66_v23 }
  0x36   :  { %223 = vmatprep.subr.mxu0 %v81_v24  ;;  %249 = vmatprep.subr.mxu1 %v81_v24 }
  0x37   :  { %224 = vmatpush3.msra.mxu0 %v65_v25  ;;  %265 = vmatpush3.msra.mxu1 %v65_v25 }
  0x38   :  { %225 = vmatprep.subr.mxu0 %v80_v26  ;;  %250 = vmatprep.subr.mxu1 %v80_v26 }
  0x39   :  { %226 = vmatpush3.msra.mxu0 %v64_v27  ;;  %266 = vmatpush3.msra.mxu1 %v64_v27 }
  0x3a   :  { %227 = vmatprep.subr.mxu0 %v79_v28  ;;  %251 = vmatprep.subr.mxu1 %v79_v28 }
  0x3b   :  { %228 = vmatpush3.msra.mxu0 %v63_v29  ;;  %267 = vmatpush3.msra.mxu1 %v63_v29 }
  0x3c   :  { %229 = vmatprep.subr.mxu0 %v78_v30  ;;  %252 = vmatprep.subr.mxu1 %v78_v30 }
  0x3d   :  { %230 = vmatpush3.msra.mxu0 %v62_v31  ;;  %268 = vmatpush3.msra.mxu1 %v62_v31 }
  0x3e   :  { %158 = vmatprep.mubr.f32.mxu0 %v59_v32  ;;  %163 = vmatprep.mubr.f32.mxu1 %v61_v33 }
  0x3f   :  { %159 = vmatmul.mubr.f32.vlgmr.msra.gmra.mxu0 %v58_v34  ;;  %164 = vmatmul.mubr.f32.vlgmr.msra.gmra.mxu1 %v60_v35 }
  0xff   :  { %v231_v36 = vpop.f32.mrf.mxu0  ;;  %v234_v37 = vpop.f32.mrf.mxu1 }
 0x101   :  { %v232_v39 = vpop.f32.mrf.mxu0  ;;  %v235_v40 = vpop.f32.mrf.mxu1 }
 0x102   :  { %v233_v41 = vadd.f32 %v232_v39, %v231_v36  ;;  %v236_v42 = vadd.f32 %v235_v40, %v234_v37 }
 0x104   :  { %v169_v43 = vadd.f32 %v233_v41, %v198_v38  ;;  %v170_v44 = vadd.f32 %v236_v42, %v198_v38 }
 0x106   :  { %178 = vst [vmem:[#allocation8] sm:$0xff] %v169_v43  ;;  %179 = vst [vmem:[#allocation8 + $0x8] sm:$0xff] %v170_v44 }
 0x107   :  { %327 = shalt.err (!%p324_p0)
}
 0x108   :  { %191 = dma.vmem_to_hbm [thread:$0]  %s186_s27, 256, %s390_s3, [#allocation5], %s346_s22, %s346_s22, %s347_s23  }
 0x109   :  { %340 = dma.done.wait [#allocation5], 256  }
 0x10a   :  { %341 = vsyncadd [#allocation5], 4294967040 }
 0x10b   :  { %195 = vsyncpa [#allocation4], 1 }
 0x10c   :  { %196 = vsyncpa [#allocation7], 1 }
 0x10d   :  { %197 = vsyncpa [#allocation5], 1 }

</bundles_post_ra>
